<compile_context>
chip_gen: v5e
topology: v5e:2x2
jax: 0.10.0
libtpu: 0.0.40
codegen_flags: <defaults>
</compile_context>

<pallas_src>
import functools

import jax
import jax.numpy as jnp
from jax.experimental import pallas as pl
from jax.experimental.pallas import tpu as pltpu

LANE = 128
_VMEM_LIMIT = 32 * 1024 * 1024       # raises v5e's 16 MiB default; default on v6e/v7x
_K1_VMEM_BUDGET = 20 * 1024 * 1024   # headroom under the 32 MiB scoped limit
_K1_MAX_ROWS = 512                   # review: 256-512 rows for kernel 1
_K2_MAX_ROWS = 1024                  # review: 512-1024 rows for kernel 2


# ---------------------------------------------------------------------------
# Kernel 1: per-pixel true-class softmax prob + per-block partial statistics
#   outputs: prob (masked_fill(~valid, 1)),
#            per-block: sum(nll over valid), #valid, #(valid & prob <= thresh)
# ---------------------------------------------------------------------------
def _ohem_stats_kernel(logits_ref, tgt_ref, prob_ref,
                       nll_psum_ref, valid_pcnt_ref, thr_pcnt_ref,
                       *, ignore_index, thresh, n_rows, r_tile):
    ir = pl.program_id(1)

    logits = logits_ref[...].astype(jnp.float32)           # (C, R, 128)
    tgt = tgt_ref[...]                                      # (1, R, 128) int32

    # mask rows past the end of the array (ragged final row-block)
    row_ids = ir * r_tile + jax.lax.broadcasted_iota(
        jnp.int32, (1, r_tile, LANE), 1)
    in_bounds = row_ids < n_rows

    valid = jnp.logical_and(in_bounds, tgt != ignore_index)
    tgt_safe = jnp.where(valid, tgt, 0)

    # stable log-softmax of the target class; class axis is leading -> pure VPU
    m = jnp.max(logits, axis=0, keepdims=True)              # (1, R, 128)
    s = jnp.sum(jnp.exp(logits - m), axis=0, keepdims=True)  # (1, R, 128)
    cls = jax.lax.broadcasted_iota(jnp.int32, logits.shape, 0)
    logit_t = jnp.sum(jnp.where(cls == tgt_safe, logits, 0.0),
                      axis=0, keepdims=True)
    log_p_t = logit_t - m - jnp.log(s)                       # log softmax[target]
    nll = -log_p_t
    prob_t = jnp.exp(log_p_t)

    prob_ref[...] = jnp.where(valid, prob_t, 1.0)            # masked_fill_(~valid, 1)

    nll_v = jnp.where(valid, nll, 0.0)[0]                    # (R, 128)
    valid_i = valid[0].astype(jnp.int32)
    below_i = jnp.logical_and(valid, prob_t <= thresh)[0].astype(jnp.int32)

    # per-block lane partials (final reduction over blocks + lanes done in JAX)
    nll_psum_ref[...] = jnp.sum(nll_v, axis=0, keepdims=True)[None, None]
    valid_pcnt_ref[...] = jnp.sum(valid_i, axis=0, keepdims=True)[None, None]
    thr_pcnt_ref[...] = jnp.sum(below_i, axis=0, keepdims=True)[None, None]


# ---------------------------------------------------------------------------
# Kernel 2: fused keep-mask + per-block partial sums of kept NLL / kept count
# ---------------------------------------------------------------------------
def _ohem_reduce_kernel(thr_ref, prob_ref, tgt_ref,
                        keep_psum_ref, keep_pcnt_ref,
                        *, ignore_index, total_rows, r_tile):
    i = pl.program_id(0)
    row_ids = i * r_tile + jax.lax.broadcasted_iota(
        jnp.int32, (r_tile, LANE), 0)
    in_bounds = row_ids < total_rows

    prob = prob_ref[...]                                     # (R, 128)
    valid = jnp.logical_and(in_bounds, tgt_ref[...] != ignore_index)
    keep = jnp.logical_and(valid, prob <= thr_ref[...])      # (1,1) broadcast

    # nll recomputed as -log(prob) on the EUP (nll never touches HBM); clamp so
    # probs that underflowed to 0 stay finite.
    nll = -jnp.log(jnp.maximum(prob, jnp.finfo(jnp.float32).tiny))

    keep_psum_ref[...] = jnp.sum(jnp.where(keep, nll, 0.0),
                                 axis=0, keepdims=True)[None]
    keep_pcnt_ref[...] = jnp.sum(keep.astype(jnp.int32),
                                 axis=0, keepdims=True)[None]


# ---------------------------------------------------------------------------
# Wrapper reproducing ProbOhemCrossEntropy2d.forward
# ---------------------------------------------------------------------------
def prob_ohem_cross_entropy_2d(pred, target, *, ignore_index, thresh=0.7,
                               min_kept=256):
    b, c, h, w = pred.shape
    hw = h * w
    n = b * hw

    hw_pad = pl.cdiv(hw, LANE) * LANE
    n_rows = hw_pad // LANE

    logits = pred.reshape(b, c, hw)
    tgt = target.reshape(b, hw).astype(jnp.int32)
    if hw_pad != hw:
        # TODO(synk): this pads (copies) the full logits tensor when h*w is not
        # a multiple of 128; a flat (b, c, hw) tiling with in-kernel tail
        # masking would avoid the copy at the cost of the packed (rows, 128)
        # layout. Padded pixels carry ignore_index so they stay inert.
        logits = jnp.pad(logits, ((0, 0), (0, 0), (0, hw_pad - hw)))
        tgt = jnp.pad(tgt, ((0, 0), (0, hw_pad - hw)),
                      constant_values=ignore_index)
    logits = logits.reshape(b * c, n_rows, LANE)      # free reshape of NCHW
    tgt3 = tgt.reshape(b, n_rows, LANE)

    # ---------------- kernel 1: tile size (VMEM-budgeted, <= 512 rows) -------
    per_row_bytes = (4 * c + 6) * LANE * 4            # ~2x dbl-buffered logits + temps
    r1 = min(_K1_MAX_ROWS, max(8, (_K1_VMEM_BUDGET // per_row_bytes) // 8 * 8))
    if n_rows <= r1:
        r1 = n_rows
    n_blk1 = pl.cdiv(n_rows, r1)

    mask_prob, nll_psum, valid_pcnt, thr_pcnt = pl.pallas_call(
        functools.partial(_ohem_stats_kernel, ignore_index=ignore_index,
                          thresh=float(thresh), n_rows=n_rows, r_tile=r1),
        out_shape=(
            jax.ShapeDtypeStruct((b, n_rows, LANE), jnp.float32),     # prob
            jax.ShapeDtypeStruct((b, n_blk1, 1, LANE), jnp.float32),  # nll psum
            jax.ShapeDtypeStruct((b, n_blk1, 1, LANE), jnp.int32),    # valid cnt
            jax.ShapeDtypeStruct((b, n_blk1, 1, LANE), jnp.int32),    # below-thresh cnt
        ),
        grid_spec=pltpu.PrefetchScalarGridSpec(
            num_scalar_prefetch=0,
            grid=(b, n_blk1),
            in_specs=[
                pl.BlockSpec((c, r1, LANE), lambda ib, ir: (ib, ir, 0)),
                pl.BlockSpec((1, r1, LANE), lambda ib, ir: (ib, ir, 0)),
            ],
            out_specs=[
                pl.BlockSpec((1, r1, LANE), lambda ib, ir: (ib, ir, 0)),
                pl.BlockSpec((1, 1, 1, LANE), lambda ib, ir: (ib, ir, 0, 0)),
                pl.BlockSpec((1, 1, 1, LANE), lambda ib, ir: (ib, ir, 0, 0)),
                pl.BlockSpec((1, 1, 1, LANE), lambda ib, ir: (ib, ir, 0, 0)),
            ],
        ),
        compiler_params=pltpu.CompilerParams(
            dimension_semantics=("parallel", "parallel"),
            vmem_limit_bytes=_VMEM_LIMIT),
    )(logits, tgt3)

    nll_sum = jnp.sum(nll_psum)        # sum(nll over valid) -> no-OHEM branch
    num_valid = jnp.sum(valid_pcnt)    # exact int32 count
    below_cnt = jnp.sum(thr_pcnt)      # #(valid & prob <= static thresh)

    # ---------------- OHEM threshold (plain JAX glue) ------------------------
    thresh_f = jnp.asarray(thresh, dtype=jnp.float32)
    if int(min_kept) > 0:
        k = min(int(min_kept), n)

        def _kth_smallest(mp):
            # TODO(synk): the exact k-th order statistic (argsort in PyTorch)
            # has no in-kernel Pallas equivalent; top_k of the negated probs is
            # used, and only on the rare path where fewer than min_kept probs
            # are already below the static threshold.
            neg_topk, _ = jax.lax.top_k(jnp.negative(mp.reshape(-1)), k)
            return jnp.maximum(thresh_f, -neg_topk[k - 1])

        threshold = jax.lax.cond(below_cnt >= k,
                                 lambda _: thresh_f,
                                 _kth_smallest,
                                 mask_prob)
    else:
        threshold = thresh_f
    thr_arr = threshold.reshape(1, 1).astype(jnp.float32)

    # ---------------- kernel 2: fused keep-mask + partial reductions ---------
    total_rows = b * n_rows
    r2 = total_rows if total_rows <= _K2_MAX_ROWS else _K2_MAX_ROWS
    n_blk2 = pl.cdiv(total_rows, r2)

    prob2 = mask_prob.reshape(total_rows, LANE)
    tgt2 = tgt3.reshape(total_rows, LANE)

    keep_psum, keep_pcnt = pl.pallas_call(
        functools.partial(_ohem_reduce_kernel, ignore_index=ignore_index,
                          total_rows=total_rows, r_tile=r2),
        out_shape=(
            jax.ShapeDtypeStruct((n_blk2, 1, LANE), jnp.float32),
            jax.ShapeDtypeStruct((n_blk2, 1, LANE), jnp.int32),
        ),
        grid_spec=pltpu.PrefetchScalarGridSpec(
            num_scalar_prefetch=0,
            grid=(n_blk2,),
            in_specs=[
                pl.BlockSpec((1, 1), lambda i: (0, 0)),
                pl.BlockSpec((r2, LANE), lambda i: (i, 0)),
                pl.BlockSpec((r2, LANE), lambda i: (i, 0)),
            ],
            out_specs=[
                pl.BlockSpec((1, 1, LANE), lambda i: (i, 0, 0)),
                pl.BlockSpec((1, 1, LANE), lambda i: (i, 0, 0)),
            ],
        ),
        compiler_params=pltpu.CompilerParams(
            dimension_semantics=("parallel",),
            vmem_limit_bytes=_VMEM_LIMIT),
    )(thr_arr, prob2, tgt2)

    keep_sum = jnp.sum(keep_psum)
    keep_cnt = jnp.sum(keep_pcnt)

    # OHEM applies iff num_valid >= min_kept and num_valid > 0 (matches the
    # PyTorch "if min_kept > num_valid: pass / elif num_valid > 0:" branches).
    do_ohem = jnp.logical_and(num_valid >= jnp.int32(min_kept), num_valid > 0)
    loss_sum = jnp.where(do_ohem, keep_sum, nll_sum)
    count = jnp.where(do_ohem, keep_cnt, num_valid).astype(jnp.float32)
    # count == 0 (every pixel ignored / nothing kept) -> NaN, matching
    # torch.nn.CrossEntropyLoss(reduction='mean', ignore_index=...).
    return (loss_sum / count).astype(jnp.float32)


# ---------------------------------------------------------------------------
# Pure-JAX reference (mirrors the PyTorch forward) for correctness checks
# ---------------------------------------------------------------------------
def _reference_loss(pred, target, *, ignore_index, thresh, min_kept):
    b, c, h, w = pred.shape
    n = b * h * w
    logits = jnp.transpose(pred, (0, 2, 3, 1)).reshape(n, c).astype(jnp.float32)
    tgt = target.reshape(n).astype(jnp.int32)

    valid = tgt != ignore_index
    tgt_safe = jnp.where(valid, tgt, 0)
    num_valid = jnp.sum(valid)

    logp = jax.nn.log_softmax(logits, axis=-1)
    idx = jnp.arange(n)
    prob_t = jnp.exp(logp[idx, tgt_safe])
    mask_prob = jnp.where(valid, prob_t, 1.0)

    threshold = jnp.float32(thresh)
    if int(min_kept) > 0:
        sorted_prob = jnp.sort(mask_prob)
        kth = sorted_prob[min(n, int(min_kept)) - 1]
        threshold = jnp.where(kth > thresh, kth, jnp.float32(thresh))
    kept = mask_prob <= threshold
    do_ohem = jnp.logical_and(num_valid >= min_kept, num_valid > 0)
    keep = jnp.where(do_ohem, jnp.logical_and(valid, kept), valid)

    nll = -logp[idx, tgt_safe]
    keep_f = keep.astype(jnp.float32)
    return jnp.sum(nll * keep_f) / jnp.sum(keep_f)


if __name__ == "__main__":
    IGNORE_INDEX = 255
    key = jax.random.PRNGKey(0)

    def run_case(name, shape_bchw, frac_ignore, thresh, min_kept, key):
        b, c, h, w = shape_bchw
        k1, k2, k3, key = jax.random.split(key, 4)
        pred = jax.random.normal(k1, (b, c, h, w), dtype=jnp.float32)
        target = jax.random.randint(k2, (b, h, w), 0, c, dtype=jnp.int32)
        target = jnp.where(jax.random.uniform(k3, (b, h, w)) < frac_ignore,
                           IGNORE_INDEX, target)
        loss = jax.block_until_ready(prob_ohem_cross_entropy_2d(
            pred, target, ignore_index=IGNORE_INDEX, thresh=thresh,
            min_kept=min_kept))
        ref = jax.block_until_ready(_reference_loss(
            pred, target, ignore_index=IGNORE_INDEX, thresh=thresh,
            min_kept=min_kept))
        assert jnp.isfinite(loss), f"{name}: non-finite loss {loss}"
        assert jnp.allclose(loss, ref, rtol=1e-4, atol=1e-5), (name, loss, ref)
        return key

    # OHEM active, fast path (>= min_kept probs already below thresh)
    key = run_case("small", (2, 4, 16, 16), 0.1, 0.7, 256, key)
    # Cityscapes-like class count
    key = run_case("c19", (1, 19, 32, 32), 0.2, 0.7, 64, key)
    # very low static threshold -> exercises the top_k fallback branch
    key = run_case("topk", (2, 4, 16, 16), 0.1, 0.05, 64, key)
    # min_kept > num_valid -> plain masked-mean cross-entropy branch
    key = run_case("no_ohem", (2, 4, 16, 16), 0.1, 0.7, 10000, key)
    # unaligned h*w + ragged row-blocks in both kernels
    key = run_case("ragged", (2, 4, 271, 271), 0.1, 0.7, 256, key)

    print("KERNEL_OK")
</pallas_src>

<mosaic_0001>
module attributes {stable_mosaic.version = 11 : i64} {
  func.func @_ohem_stats_kernel(%arg0: i32, %arg1: i32, %arg2: memref<4x2x128xf32, #tpu.memory_space<vmem>>, %arg3: memref<1x2x128xi32, #tpu.memory_space<vmem>>, %arg4: memref<1x2x128xf32, #tpu.memory_space<vmem>>, %arg5: memref<1x1x1x128xf32, #tpu.memory_space<vmem>>, %arg6: memref<1x1x1x128xi32, #tpu.memory_space<vmem>>, %arg7: memref<1x1x1x128xi32, #tpu.memory_space<vmem>>) attributes {dimension_semantics = [#tpu.dimension_semantics<parallel>, #tpu.dimension_semantics<parallel>], iteration_bounds = array<i64: 2, 1>, scalar_prefetch = 0 : i64, scratch_operands = 0 : i64, tpu.core_type = #tpu.core_type<tc>, window_params = [{transform_indices = @transform_0, window_bounds = array<i64: 4, 2, 128>}, {transform_indices = @transform_1, window_bounds = array<i64: 1, 2, 128>}, {transform_indices = @transform_2, window_bounds = array<i64: 1, 2, 128>}, {transform_indices = @transform_3, window_bounds = array<i64: 1, 1, 1, 128>}, {transform_indices = @transform_4, window_bounds = array<i64: 1, 1, 1, 128>}, {transform_indices = @transform_5, window_bounds = array<i64: 1, 1, 1, 128>}]} {
    %c0 = arith.constant 0 : index
    %c0_0 = arith.constant 0 : index
    %c0_1 = arith.constant 0 : index
    %0 = vector.load %arg2[%c0, %c0_0, %c0_1] : memref<4x2x128xf32, #tpu.memory_space<vmem>>, vector<4x2x128xf32>
    %c0_2 = arith.constant 0 : index
    %c0_3 = arith.constant 0 : index
    %c0_4 = arith.constant 0 : index
    %1 = vector.load %arg3[%c0_2, %c0_3, %c0_4] : memref<1x2x128xi32, #tpu.memory_space<vmem>>, vector<1x2x128xi32>
    %c2_i32 = arith.constant 2 : i32
    %2 = arith.muli %arg1, %c2_i32 : i32
    %3 = tpu.iota {dimensions = array<i32: 1>} : vector<1x2x128xi32>
    %4 = vector.broadcast %2 : i32 to vector<1x2x128xi32>
    %5 = arith.addi %4, %3 : vector<1x2x128xi32>
    %c2_i32_5 = arith.constant 2 : i32
    %6 = vector.broadcast %c2_i32_5 : i32 to vector<1x2x128xi32>
    %7 = arith.cmpi slt, %5, %6 : vector<1x2x128xi32>
    %c255_i32 = arith.constant 255 : i32
    %8 = vector.broadcast %c255_i32 : i32 to vector<1x2x128xi32>
    %9 = arith.cmpi ne, %1, %8 : vector<1x2x128xi32>
    %10 = arith.andi %7, %9 : vector<1x2x128xi1>
    %c0_i32 = arith.constant 0 : i32
    %11 = vector.broadcast %c0_i32 : i32 to vector<1x2x128xi32>
    %12 = arith.select %10, %1, %11 : vector<1x2x128xi1>, vector<1x2x128xi32>
    %cst = arith.constant dense<0xFF800000> : vector<2x128xf32>
    %13 = vector.multi_reduction <maximumf>, %0, %cst [0] : vector<4x2x128xf32> to vector<2x128xf32>
    %14 = vector.shape_cast %13 : vector<2x128xf32> to vector<1x2x128xf32>
    %15 = vector.broadcast %14 : vector<1x2x128xf32> to vector<4x2x128xf32>
    %16 = arith.subf %0, %15 : vector<4x2x128xf32>
    %17 = math.exp %16 : vector<4x2x128xf32>
    %cst_6 = arith.constant dense<0.000000e+00> : vector<2x128xf32>
    %18 = vector.multi_reduction <add>, %17, %cst_6 [0] : vector<4x2x128xf32> to vector<2x128xf32>
    %19 = vector.shape_cast %18 : vector<2x128xf32> to vector<1x2x128xf32>
    %20 = tpu.iota {dimensions = array<i32: 0>} : vector<4x2x128xi32>
    %21 = vector.broadcast %12 : vector<1x2x128xi32> to vector<4x2x128xi32>
    %22 = arith.cmpi eq, %20, %21 : vector<4x2x128xi32>
    %cst_7 = arith.constant 0.000000e+00 : f32
    %23 = vector.broadcast %cst_7 : f32 to vector<4x2x128xf32>
    %24 = arith.select %22, %0, %23 : vector<4x2x128xi1>, vector<4x2x128xf32>
    %cst_8 = arith.constant dense<0.000000e+00> : vector<2x128xf32>
    %25 = vector.multi_reduction <add>, %24, %cst_8 [0] : vector<4x2x128xf32> to vector<2x128xf32>
    %26 = vector.shape_cast %25 : vector<2x128xf32> to vector<1x2x128xf32>
    %27 = arith.subf %26, %14 : vector<1x2x128xf32>
    %28 = math.log %19 : vector<1x2x128xf32>
    %29 = arith.subf %27, %28 : vector<1x2x128xf32>
    %cst_9 = arith.constant 0.000000e+00 : f32
    %30 = vector.broadcast %cst_9 : f32 to vector<1x2x128xf32>
    %31 = arith.subf %30, %29 : vector<1x2x128xf32>
    %32 = math.exp %29 : vector<1x2x128xf32>
    %cst_10 = arith.constant 1.000000e+00 : f32
    %33 = vector.broadcast %cst_10 : f32 to vector<1x2x128xf32>
    %34 = arith.select %10, %32, %33 : vector<1x2x128xi1>, vector<1x2x128xf32>
    %c0_11 = arith.constant 0 : index
    %c0_12 = arith.constant 0 : index
    %c0_13 = arith.constant 0 : index
    %35 = vector.load %arg4[%c0_11, %c0_12, %c0_13] : memref<1x2x128xf32, #tpu.memory_space<vmem>>, vector<1x2x128xf32>
    tpu.vector_store %arg4[%c0_11, %c0_12, %c0_13], %34 {strides = array<i32>} : memref<1x2x128xf32, #tpu.memory_space<vmem>>, vector<1x2x128xf32>,
    %cst_14 = arith.constant 0.000000e+00 : f32
    %36 = vector.broadcast %cst_14 : f32 to vector<1x2x128xf32>
    %37 = arith.select %10, %31, %36 : vector<1x2x128xi1>, vector<1x2x128xf32>
    %38 = vector.shape_cast %37 : vector<1x2x128xf32> to vector<2x128xf32>
    %39 = vector.shape_cast %10 : vector<1x2x128xi1> to vector<2x128xi1>
    %40 = arith.extui %39 : vector<2x128xi1> to vector<2x128xi32>
    %cst_15 = arith.constant 0.699999988 : f32
    %41 = vector.broadcast %cst_15 : f32 to vector<1x2x128xf32>
    %42 = arith.cmpf ole, %32, %41 : vector<1x2x128xf32>
    %43 = arith.andi %10, %42 : vector<1x2x128xi1>
    %44 = vector.shape_cast %43 : vector<1x2x128xi1> to vector<2x128xi1>
    %45 = arith.extui %44 : vector<2x128xi1> to vector<2x128xi32>
    %cst_16 = arith.constant dense<0.000000e+00> : vector<128xf32>
    %46 = vector.multi_reduction <add>, %38, %cst_16 [0] : vector<2x128xf32> to vector<128xf32>
    %47 = vector.shape_cast %46 : vector<128xf32> to vector<1x128xf32>
    %48 = vector.shape_cast %47 : vector<1x128xf32> to vector<1x1x1x128xf32>
    %c0_17 = arith.constant 0 : index
    %c0_18 = arith.constant 0 : index
    %c0_19 = arith.constant 0 : index
    %c0_20 = arith.constant 0 : index
    %49 = vector.load %arg5[%c0_17, %c0_18, %c0_19, %c0_20] : memref<1x1x1x128xf32, #tpu.memory_space<vmem>>, vector<1x1x1x128xf32>
    tpu.vector_store %arg5[%c0_17, %c0_18, %c0_19, %c0_20], %48 {strides = array<i32>} : memref<1x1x1x128xf32, #tpu.memory_space<vmem>>, vector<1x1x1x128xf32>,
    %cst_21 = arith.constant dense<0> : vector<128xi32>
    %50 = vector.multi_reduction <add>, %40, %cst_21 [0] : vector<2x128xi32> to vector<128xi32>
    %51 = vector.shape_cast %50 : vector<128xi32> to vector<1x128xi32>
    %52 = vector.shape_cast %51 : vector<1x128xi32> to vector<1x1x1x128xi32>
    %c0_22 = arith.constant 0 : index
    %c0_23 = arith.constant 0 : index
    %c0_24 = arith.constant 0 : index
    %c0_25 = arith.constant 0 : index
    %53 = vector.load %arg6[%c0_22, %c0_23, %c0_24, %c0_25] : memref<1x1x1x128xi32, #tpu.memory_space<vmem>>, vector<1x1x1x128xi32>
    tpu.vector_store %arg6[%c0_22, %c0_23, %c0_24, %c0_25], %52 {strides = array<i32>} : memref<1x1x1x128xi32, #tpu.memory_space<vmem>>, vector<1x1x1x128xi32>,
    %cst_26 = arith.constant dense<0> : vector<128xi32>
    %54 = vector.multi_reduction <add>, %45, %cst_26 [0] : vector<2x128xi32> to vector<128xi32>
    %55 = vector.shape_cast %54 : vector<128xi32> to vector<1x128xi32>
    %56 = vector.shape_cast %55 : vector<1x128xi32> to vector<1x1x1x128xi32>
    %c0_27 = arith.constant 0 : index
    %c0_28 = arith.constant 0 : index
    %c0_29 = arith.constant 0 : index
    %c0_30 = arith.constant 0 : index
    %57 = vector.load %arg7[%c0_27, %c0_28, %c0_29, %c0_30] : memref<1x1x1x128xi32, #tpu.memory_space<vmem>>, vector<1x1x1x128xi32>
    tpu.vector_store %arg7[%c0_27, %c0_28, %c0_29, %c0_30], %56 {strides = array<i32>} : memref<1x1x1x128xi32, #tpu.memory_space<vmem>>, vector<1x1x1x128xi32>,
    return
  }
  func.func @transform_0(%arg0: i32, %arg1: i32) -> (i32, i32, i32) {
    %c0_i32 = arith.constant 0 : i32
    %c0_i32_0 = arith.constant 0 : i32
    return %arg0, %arg1, %c0_i32 : i32, i32, i32
  }
  func.func @transform_1(%arg0: i32, %arg1: i32) -> (i32, i32, i32) {
    %c0_i32 = arith.constant 0 : i32
    %c0_i32_0 = arith.constant 0 : i32
    return %arg0, %arg1, %c0_i32 : i32, i32, i32
  }
  func.func @transform_2(%arg0: i32, %arg1: i32) -> (i32, i32, i32) {
    %c0_i32 = arith.constant 0 : i32
    %c0_i32_0 = arith.constant 0 : i32
    return %arg0, %arg1, %c0_i32 : i32, i32, i32
  }
  func.func @transform_3(%arg0: i32, %arg1: i32) -> (i32, i32, i32, i32) {
    %c0_i32 = arith.constant 0 : i32
    %c0_i32_0 = arith.constant 0 : i32
    %c0_i32_1 = arith.constant 0 : i32
    return %arg0, %arg1, %c0_i32, %c0_i32_0 : i32, i32, i32, i32
  }
  func.func @transform_4(%arg0: i32, %arg1: i32) -> (i32, i32, i32, i32) {
    %c0_i32 = arith.constant 0 : i32
    %c0_i32_0 = arith.constant 0 : i32
    %c0_i32_1 = arith.constant 0 : i32
    return %arg0, %arg1, %c0_i32, %c0_i32_0 : i32, i32, i32, i32
  }
  func.func @transform_5(%arg0: i32, %arg1: i32) -> (i32, i32, i32, i32) {
    %c0_i32 = arith.constant 0 : i32
    %c0_i32_0 = arith.constant 0 : i32
    %c0_i32_1 = arith.constant 0 : i32
    return %arg0, %arg1, %c0_i32, %c0_i32_0 : i32, i32, i32, i32
  }
}

</mosaic_0001>

<bundles_post_ra>
// kernel: tpu_custom_call.1
= control target key start
LH: loop header
LB: loop body
LE: loop exit
PB: predicated region body
PF: predicated region fallthrough
CT: control target
= control target key end

     0   :  { %s1340_s0 = inlined_call_operand.hbm [shape: f32[8,2,128], index: 0, kind: input, shape index: {}]   ;;  %s1341_s1 = inlined_call_operand.hbm [shape: s32[2,2,128], index: 1, kind: input, shape index: {}]   ;;  %s1342_s2 = inlined_call_operand.hbm [shape: f32[2,2,128], index: 2, kind: output, shape index: {0}]   ;;  %s1343_s3 = inlined_call_operand.hbm [shape: f32[2,1,1,128], index: 3, kind: output, shape index: {1}]   ;;  %s1344_s4 = inlined_call_operand.hbm [shape: s32[2,1,1,128], index: 4, kind: output, shape index: {2}]   ;;  %s1345_s5 = inlined_call_operand.hbm [shape: s32[2,1,1,128], index: 5, kind: output, shape index: {3}]  }
   0x1   :  { %1349 = sst [smem:[#allocation20_spill]] %s1340_s0 }
   0x2   :  { %11 = vsyncpa [#allocation3], 0 }
   0x3   :  { %13 = vsyncpa [#allocation3 + $0x1], 0 }
   0x4   :  { %14 = vsyncpa [#allocation6], 0 }
   0x5   :  { %16 = vsyncpa [#allocation6 + $0x1], 0 }
   0x6   :  { %17 = vsyncpa [#allocation4], 0 }
   0x7   :  { %19 = vsyncpa [#allocation4 + $0x1], 0 }
   0x8   :  { %20 = vsyncpa [#allocation9], 0 }
   0x9   :  { %22 = vsyncpa [#allocation9 + $0x1], 0 }
   0xa   :  { %23 = vsyncpa [#allocation12], 0 }
   0xb   :  { %25 = vsyncpa [#allocation12 + $0x1], 0  ;;  %s1078_s18 = smov 0   ;;  %s1080_s19 = smov 0  }
   0xc   :  { %s1082_s20 = smov 0   ;;  %s1084_s21 = smov 0  }
   0xd   :  { %s1086_s22 = smov 0   ;;  %s1088_s23 = smov 0  }
   0xe LB: > { %s1109_s24 = sadd.s32 4294967295, %s1043_s23   ;;  %s1346_s25 = sadd.s32 4294967294, %s1043_s23   ;;  %s1043_s23 = sphi %s1088_s23, %s31_s23   ;;  %s1039_s22 = sphi %s1086_s22, %s1368_s22   ;;  %s1035_s21 = sphi %s1084_s21, %s1367_s21   ;;  %s1031_s20 = sphi %s1082_s20, %s1366_s20   ;;  %s1027_s19 = sphi %s1080_s19, %s1365_s19   ;;  %s1023_s18 = sphi %s1078_s18, %s1364_s18  }
   0xf   : > { %s43_s26 = sadd.s32 1, %s1039_s22  ;;  %s52_s27 = sadd.s32 1, %s1031_s20 }
  0x10   : > { %p45_p0 = scmp.ge.s32.totalorder %s43_s26, 2  ;;  %p59_p1 = scmp.ne.s32.totalorder %s1031_s20, %s1027_s19 }
  0x11   : > { %p60_p2 = scmp.eq.s32.totalorder %s1043_s23, 0  ;;  %p65_p3 = scmp.ne.s32.totalorder %s1027_s19, %s1023_s18 }
  0x12   : > { %s1370_s26 = smov (%p45_p0, %s43_s26), 0  ;;  %p66_p5 = scmp.eq.s32.totalorder %s1109_s24, 0 }
  0x13   : > { %1350 = sst [smem:[#allocation18_spill]] %s1370_s26  ;;  %p1121_p4 = por %p60_p2, %p59_p1 }
  0x14   : > { %s47_s29 = ssub.s32 %s1039_s22, %s1370_s26  ;;  %p119_p6 = scmp.eq.s32.totalorder %s1109_s24, 1 }
  0x15   : > { %p50_p7 = scmp.eq.s32.totalorder %s47_s29, 0  ;;  %p1129_p8 = por %p66_p5, %p65_p3 }
  0x16   : > { %p1133_p9 = por %p119_p6, %p59_p1  ;;  %p125_p10 = scmp.eq.s32.totalorder %s1346_s25, 1 }
  0x17   : > { %s1140_s7 = scalar_select %p50_p7, %s1031_s20, %s52_s27  }
  0x18   : > { %p1142_p11 = por %p125_p10, %p65_p3  ;;  %p693_p12 = scmp.ge.s32.totalorder %s1043_s23, 2 }
  0x19   : > { %1354 = sst [smem:[#allocation19_spill]] %s1140_s7  ;;  %p740_p13 = scmp.lt.s32.totalorder %s1043_s23, 2 }
  0x1a   : > { %s229_s9 = sand.u32 1, %s1031_s20   ;;  %s707_s11 = sshll.u32 %s1039_s22, 3 }
  0x1b   : > { %s694_s10 = sshll.u32 %s229_s9, 3  ;;  %s1356_s0 = sld [smem:[#allocation20_spill]] }
  0x1c   : > { %s233_s15 = scalar_lea.vmem [#allocation2], %s694_s10  ;;  %p1155_p0 = pnand %p740_p13, %p1121_p4 }
  0x1d   : > { %s242_s16 = sshll.u32 %s233_s15, 4  ;;  %p699_p1 = scmp.ge.s32.totalorder %s1043_s23, 1  ;;  %s243_s16 = int_to_ptr.vmem [resolvable:$true] %s242_s16 }
  0x1e   : > { %s230_s29 = scalar_lea.sflag [#allocation3], %s229_s9  ;;  %s1045_s25 = smov 32  }
  0x1f   : > { %s1046_s26 = smov 2   ;;  %p270_p2 = scmp.lt.s32.totalorder %s1043_s23, 3 }
  0x20   : > { %s698_s10 = sshll.u32 %s1039_s22, 1  ;;  %s253_s7 = scalar_lea.sflag [#allocation6], %s229_s9 }
  0x21   : > { %s239_s14 = scalar_lea.hbm %s1356_s0, %s707_s11  ;;  %s697_s11 = sshll.u32 %s229_s9, 1 }
  0x22   : > { %s240_s17 = sshll.u32 %s239_s14, 4  ;;  %p271_p3 = pnand %p699_p1, %p270_p2  ;;  %s241_s17 = int_to_ptr.hbm [resolvable:$true] %s240_s17 }
  0x23   : > { %723 = dma.hbm_to_vmem [thread:$0]  (!%p1155_p0), %s241_s17, 128, %s243_s16, %s230_s29, %s1045_s25, %s1045_s25, %s1046_s26  }
  0x24   : > { %s261_s28 = scalar_lea.hbm %s1341_s1, %s698_s10  ;;  %s256_s14 = scalar_lea.vmem [#allocation5], %s697_s11 }
  0x25   : > { %s265_s15 = sshll.u32 %s256_s14, 4  ;;  %s263_s0 = sshll.u32 %s261_s28, 4  ;;  %s266_s15 = int_to_ptr.vmem [resolvable:$true] %s265_s15  ;;  %s264_s0 = int_to_ptr.hbm [resolvable:$true] %s263_s0 }
  0x26   : > { %726 = dma.hbm_to_vmem [thread:$0]  (!%p1155_p0), %s264_s0, 32, %s266_s15, %s253_s7  }
  0x27   : > { %274 = sbr.rel (%p271_p3) target bundleno = 140 (0x8c), region = 28  ;;  %s1170_s25 = sand.u32 (!%p271_p3), 1, %s1027_s19  }
  0x28   : > { %s700_s26 = sshll.u32 (!%p271_p3), %s1170_s25, 3  ;;  %s277_s16 = scalar_lea.sflag (!%p271_p3), [#allocation3], %s1170_s25 }
  0x29   : > { %s280_s17 = scalar_lea.vmem (!%p271_p3), [#allocation2], %s700_s26 }
  0x2c   : > { %1002 = dma.done.wait (%p1129_p8), %s277_s16, 128  }
  0x2d   : > { %1004 = vsyncadd (%p1129_p8), %s277_s16, 4294967168  ;;  %s701_s0 = sshll.u32 %s1170_s25, 1  ;;  %s287_s7 = scalar_lea.sflag [#allocation6], %s1170_s25 }
  0x2e   : > { %s290_s9 = scalar_lea.vmem [#allocation5], %s701_s0 }
  0x2f   : > { %1006 = dma.done.wait (%p1129_p8), %s287_s7, 32  }
  0x30   : > { %1008 = vsyncadd (%p1129_p8), %s287_s7, 4294967264  ;;  %v342_v0 = vlaneseq  ;;  %vm350_vm0 = vcmask 1041408   ;;  %v336_v2 = vld [vmem:[%s280_s17] sm:$0x3]  ;;  %v337_v3 = vld [vmem:[%s280_s17 + $0x2] sm:$0x3]  ;;  %s468_s26 = scalar_lea.hbm %s1343_s3, %s1035_s21 }
  0x31   : > { %v338_v4 = vld [vmem:[%s280_s17 + $0x4] sm:$0x3]  ;;  %v339_v5 = vld [vmem:[%s280_s17 + $0x6] sm:$0x3]  ;;  %v340_v6 = vld [vmem:[%s290_s9] sm:$0x3]  ;;  %s482_s9 = scalar_lea.hbm %s1344_s4, %s1035_s21 }
  0x32   : > { %v343_v1 = vshrl.u32 %v342_v0, 7  ;;  %v351_v7 = vsel %vm350_vm0, %v336_v2, -inf  ;;  %v352_v8 = vsel %vm350_vm0, %v337_v3, -inf  ;;  %vm347_vm2 = vcmp.ne.s32.totalorder %v340_v6, 255  ;;  %s328_s30 = scalar_lea.vmem [#allocation10], %s1170_s25  ;;  %s704_s27 = sshll.u32 %s1035_s21, 1 }
  0x33   : > { %v353_v9 = vsel %vm350_vm0, %v338_v4, -inf  ;;  %v354_v10 = vsel %vm350_vm0, %v339_v5, -inf  ;;  %v355_v11 = vmax.f32 %v351_v7, %v352_v8  ;;  %v1047_v28 = vmov 0   ;;  %s454_s10 = scalar_lea.hbm %s1342_s2, %s704_s27  ;;  %s316_s12 = scalar_lea.vmem [#allocation7], %s701_s0 }
  0x34   : > { %vm346_vm1 = vcmp.lt.s32.totalorder %v343_v1, 2  ;;  %v356_v13 = vmax.f32 %v353_v9, %v354_v10  ;;  %s456_s13 = sshll.u32 %s316_s12, 4  ;;  %s458_s28 = sshll.u32 %s454_s10, 4  ;;  %s1219_s13 = int_to_ptr.vmem [resolvable:$true] %s456_s13  ;;  %s459_s28 = int_to_ptr.hbm [resolvable:$true] %s458_s28 }
  0x35   : > { %vm1190_vm3 = vmand %vm346_vm1, %vm347_vm2  ;;  %s1348_s16 = scalar_lea.vmem [#allocation8], %s1170_s25  ;;  %s435_s27 = sand.u32 1, %s1109_s24  }
  0x36   : > { %v357_v14 = vmax.f32 %v355_v11, %v356_v13  ;;  %v349_v15 = vsel %vm1190_vm3, %v340_v6, 0  ;;  %v402_v29 = vsel %vm1190_vm3, 1, %v1047_v28  ;;  %s1228_s17 = sshll.u32 %s1348_s16, 4  ;;  %s1239_s29 = sshll.u32 %s468_s26, 4  ;;  %s471_s17 = int_to_ptr.vmem [resolvable:$true] %s1228_s17  ;;  %s473_s29 = int_to_ptr.hbm [resolvable:$true] %s1239_s29 }
  0x37   : > { %vm377_vm4 = vcmp.eq.s32.totalorder %v349_v15, 0  ;;  %vm378_vm5 = vcmp.eq.s32.totalorder %v349_v15, 1  ;;  %vm379_vm6 = vcmp.eq.s32.totalorder %v349_v15, 2  ;;  %v414_v32 = vsel %vm350_vm0, %v402_v29, 0  ;;  %s431_s11 = scalar_lea.sflag [#allocation4], %s1170_s25  ;;  %s879_s10 = sshra.s32 %s459_s28, 4  ;;  %s880_s10 = int_to_ptr.hbm [resolvable:$true] %s879_s10 }
  0x38   : > { %v358_v16 = vsub.f32 %v336_v2, %v357_v14  ;;  %v359_v17 = vsub.f32 %v337_v3, %v357_v14  ;;  %v360_v18 = vsub.f32 %v338_v4, %v357_v14  ;;  %v361_v19 = vsub.f32 %v339_v5, %v357_v14  ;;  %s881_s14 = scalar_lea.hbm %s880_s10, 2  ;;  %s885_s7 = scalar_lea.hbm %s1342_s2, 4 }
  0x39   : > { %v381_v24 = vsel %vm377_vm4, %v336_v2, 0.0  ;;  %v382_v25 = vsel %vm378_vm5, %v337_v3, 0.0  ;;  %v383_v31 = vsel %vm379_vm6, %v338_v4, 0.0  ;;  %vm380_vm7 = vcmp.eq.s32.totalorder %v349_v15, 3  ;;  %p882_p4 = scmp.ne.s32.totalorder %s880_s10, %s881_s14  ;;  %p886_p7 = scmp.lt.s32.totalorder %s880_s10, %s1342_s2 }
  0x3a   : > { %v362_v20 = vmul.f32 1.442695, %v358_v16  ;;  %v364_v21 = vmul.f32 1.442695, %v359_v17  ;;  %v366_v22 = vmul.f32 1.442695, %v360_v18  ;;  %p887_p8 = scmp.lt.s32.totalorder %s885_s7, %s881_s14 }
  0x3b   : > { %v368_v23 = vmul.f32 1.442695, %v361_v19  ;;  %v385_v26 = vsel %vm350_vm0, %v381_v24, 0.0  ;;  %v386_v27 = vsel %vm350_vm0, %v382_v25, 0.0  ;;  %v415_v35 = vrot.slane %v414_v32, 4  ;;  %p883_p5 = pnand %p882_p4, %p1133_p9 }
  0x3c   : > { %793 = vpow2.f32 %v362_v20  ;;  %v387_v38 = vadd.f32 %v386_v27, %v385_v26  ;;  %v388_v42 = vsel %vm350_vm0, %v383_v31, 0.0  ;;  %v384_v45 = vsel %vm380_vm7, %v339_v5, 0.0  ;;  %p888_p10 = por %p887_p8, %p886_p7 }
  0x3d   : > { %795 = vpow2.f32 %v364_v21  ;;  %v416_v43 = vadd.s32 %v415_v35, %v414_v32  ;;  %v390_v50 = vsel %vm350_vm0, %v384_v45, 0.0  ;;  %p884_p6 = pneg %p883_p5 }
  0x3e   : > { %797 = vpow2.f32 %v366_v22  ;;  %v389_v48 = vadd.f32 %v388_v42, %v387_v38 }
  0x3f   : > { %799 = vpow2.f32 %v368_v23  ;;  %v417_v47 = vrot.slane %v416_v43, 2  ;;  %p889_p13 = pnand %p888_p10, %p884_p6 }
  0x40   : > { %v391_v53 = vadd.f32 %v390_v50, %v389_v48 }
  0x41   : > { %v418_v51 = vadd.s32 %v417_v47, %v416_v43 }
  0x42   : > { %v794_v30 = vpop.eup %793  ;;  %v392_v55 = vsub.f32 %v391_v53, %v357_v14 }
  0x43   : > { %v796_v33 = vpop.eup %795  ;;  %v370_v34 = vsel %vm350_vm0, %v794_v30, 0.0  ;;  %v419_v52 = vrot.slane %v418_v51, 1 }
  0x44   : > { %v798_v36 = vpop.eup %797  ;;  %v371_v37 = vsel %vm350_vm0, %v796_v33, 0.0 }
  0x45   : > { %v800_v39 = vpop.eup %799  ;;  %v372_v40 = vadd.f32 %v371_v37, %v370_v34  ;;  %v373_v41 = vsel %vm350_vm0, %v798_v36, 0.0  ;;  %v420_v54 = vadd.s32 %v419_v52, %v418_v51 }
  0x46   : > { %v375_v44 = vsel %vm350_vm0, %v800_v39, 0.0 }
  0x47   : > { %v374_v46 = vadd.f32 %v373_v41, %v372_v40  ;;  %421 = vst [vmem:[%s328_s30] sm:$0x1] %v420_v54 }
  0x49   : > { %v376_v49 = vadd.f32 %v375_v44, %v374_v46 }
  0x4b   : > { %801 = vlog2.f32 %v376_v49 }
  0x51   : > { %v802_v56 = vpop.eup %801 }
  0x52   : > { %v394_v57 = vmul.f32 0.6931472, %v802_v56 }
  0x54   : > { %v395_v58 = vsub.f32 %v392_v55, %v394_v57 }
  0x56   : > { %v396_v59 = vsub.f32 0.0, %v395_v58  ;;  %v397_v60 = vmul.f32 1.442695, %v395_v58 }
  0x58   : > { %v401_v61 = vsel %vm1190_vm3, %v396_v59, 0.0  ;;  %803 = vpow2.f32 %v397_v60 }
  0x59   : > { %v406_v62 = vsel %vm350_vm0, %v401_v61, 0.0 }
  0x5a   : > { %v407_v63 = vrot.slane %v406_v62, 4 }
  0x5c   : > { %v408_v0 = vadd.f32 %v407_v63, %v406_v62 }
  0x5e   : > { %v804_v1 = vpop.eup %803  ;;  %v409_v2 = vrot.slane %v408_v0, 2 }
  0x5f   : > { %v399_v3 = vsel %vm1190_vm3, %v804_v1, 1.0  ;;  %vm403_vm8 = vcmp.le.f32.partialorder %v804_v1, 0.7 }
  0x60   : > { %v410_v4 = vadd.f32 %v409_v2, %v408_v0  ;;  %400 = vst [vmem:[%s316_s12] sm:$0x3] %v399_v3  ;;  %vm404_vm9 = vmand %vm1190_vm3, %vm403_vm8 }
  0x61   : > { %v405_v5 = vsel %vm404_vm9, 1, %v1047_v28 }
  0x62   : > { %892 = shalt.err (!%p889_p13)
}
  0x63   : > { %712 = dma.vmem_to_hbm [thread:$0]  (%p1133_p9), %s1219_s13, 32, %s459_s28, %s431_s11   ;;  %v411_v6 = vrot.slane %v410_v4, 1  ;;  %v422_v7 = vsel %vm350_vm0, %v405_v5, 0 }
  0x64   : > { %s1255_s26 = sshll.u32 %s328_s30, 4  ;;  %s1258_s16 = sshll.u32 %s482_s9, 4  ;;  %v423_v8 = vrot.slane %v422_v7, 4  ;;  %s485_s26 = int_to_ptr.vmem [resolvable:$true] %s1255_s26  ;;  %s487_s16 = int_to_ptr.hbm [resolvable:$true] %s1258_s16 }
  0x65   : > { %v412_v9 = vadd.f32 %v411_v6, %v410_v4  ;;  %s1360_s10 = scalar_lea.vmem [#allocation8], %s1170_s25  ;;  %s496_s30 = scalar_lea.hbm %s1345_s5, %s1035_s21 }
  0x66   : > { %v424_v10 = vadd.s32 %v423_v8, %v422_v7  ;;  %s436_s11 = scalar_lea.sflag [#allocation9], %s435_s27  ;;  %s907_s9 = sshra.s32 %s473_s29, 4  ;;  %s908_s9 = int_to_ptr.hbm [resolvable:$true] %s907_s9 }
  0x67   : > { %413 = vst [vmem:[%s1360_s10] sm:$0x1] %v412_v9  ;;  %s909_s14 = scalar_lea.hbm %s908_s9, 1  ;;  %s913_s7 = scalar_lea.hbm %s1343_s3, 2 }
  0x68   : > { %v425_v11 = vrot.slane %v424_v10, 2  ;;  %p910_p0 = scmp.ne.s32.totalorder %s908_s9, %s909_s14  ;;  %p914_p3 = scmp.lt.s32.totalorder %s908_s9, %s1343_s3 }
  0x69   : > { %p915_p4 = scmp.lt.s32.totalorder %s913_s7, %s909_s14 }
  0x6a   : > { %p911_p1 = pnand %p910_p0, %p1133_p9 }
  0x6b   : > { %p916_p5 = por %p915_p4, %p914_p3 }
  0x6c   : > { %p912_p2 = pneg %p911_p1 }
  0x6e   : > { %p917_p6 = pnand %p916_p5, %p912_p2 }
  0x70   : > { %920 = shalt.err (!%p917_p6)
}
  0x71   : > { %713 = dma.vmem_to_hbm [thread:$0]  (%p1133_p9), %s471_s17, 16, %s473_s29, %s436_s11  }
  0x72   : > { %s935_s24 = sshra.s32 %s487_s16, 4  ;;  %s941_s9 = scalar_lea.hbm %s1344_s4, 2  ;;  %s936_s24 = int_to_ptr.hbm [resolvable:$true] %s935_s24 }
  0x73   : > { %s937_s27 = scalar_lea.hbm %s936_s24, 1  ;;  %p942_p13 = scmp.lt.s32.totalorder %s936_s24, %s1344_s4 }
  0x74   : > { %p938_p7 = scmp.ne.s32.totalorder %s936_s24, %s937_s27  ;;  %p943_p0 = scmp.lt.s32.totalorder %s941_s9, %s937_s27 }
  0x76   : > { %p939_p8 = pnand %p938_p7, %p1133_p9  ;;  %p944_p1 = por %p943_p0, %p942_p13 }
  0x78   : > { %p940_p10 = pneg %p939_p8 }
  0x7a   : > { %p945_p2 = pnand %p944_p1, %p940_p10 }
  0x7c   : > { %948 = shalt.err (!%p945_p2)
}
  0x7d   : > { %714 = dma.vmem_to_hbm [thread:$0]  (%p1133_p9), %s485_s26, 16, %s487_s16, %s436_s11   ;;  %v426_v12 = vadd.s32 %v425_v11, %v424_v10 }
  0x7e   : > { %s334_s17 = scalar_lea.vmem [#allocation11], %s1170_s25  ;;  %s500_s12 = sshll.u32 %s496_s30, 4  ;;  %s501_s12 = int_to_ptr.hbm [resolvable:$true] %s500_s12 }
  0x7f   : > { %s498_s29 = sshll.u32 %s334_s17, 4  ;;  %v427_v13 = vrot.slane %v426_v12, 1  ;;  %s444_s10 = scalar_lea.sflag [#allocation12], %s1170_s25  ;;  %s499_s29 = int_to_ptr.vmem [resolvable:$true] %s498_s29 }
  0x80   : > { %s963_s24 = sshra.s32 %s501_s12, 4  ;;  %s969_s11 = scalar_lea.hbm %s1345_s5, 2  ;;  %s964_s24 = int_to_ptr.hbm [resolvable:$true] %s963_s24 }
  0x81   : > { %v428_v14 = vadd.s32 %v427_v13, %v426_v12  ;;  %s965_s27 = scalar_lea.hbm %s964_s24, 1  ;;  %p970_p6 = scmp.lt.s32.totalorder %s964_s24, %s1345_s5 }
  0x82   : > { %p966_p3 = scmp.ne.s32.totalorder %s964_s24, %s965_s27  ;;  %p971_p7 = scmp.lt.s32.totalorder %s969_s11, %s965_s27 }
  0x83   : > { %429 = vst [vmem:[%s334_s17] sm:$0x1] %v428_v14 }
  0x84   : > { %p967_p4 = pnand %p966_p3, %p1133_p9  ;;  %p972_p8 = por %p971_p7, %p970_p6 }
  0x86   : > { %p968_p5 = pneg %p967_p4 }
  0x88   : > { %p973_p10 = pnand %p972_p8, %p968_p5 }
  0x8a   : > { %976 = shalt.err (!%p973_p10)
}
  0x8b   : > { %715 = dma.vmem_to_hbm [thread:$0]  (%p1133_p9), %s499_s29, 16, %s501_s12, %s444_s10  }
  0x8c PF: > { %s512_s25 = sand.u32 1, %s1023_s18   ;;  %p728_p13 = pnand %p693_p12, %p1142_p11 }
  0x8d   : > { %s513_s30 = scalar_lea.sflag [#allocation4], %s512_s25 }
  0x8e   : > { %p729_p0 = pneg %p728_p13 }
  0x90   : > { %1010 = dma.done.wait (%p729_p0), %s513_s30, 32  }
  0x91   : > { %1012 = vsyncadd (%p729_p0), %s513_s30, 4294967264  ;;  %s1361_s28 = sadd.s32 4294967294, %s1043_s23  }
  0x92   : > { %s522_s9 = sand.u32 1, %s1361_s28  }
  0x93   : > { %s523_s14 = scalar_lea.sflag [#allocation9], %s522_s9 }
  0x94   : > { %1014 = dma.done.wait (%p729_p0), %s523_s14, 32  }
  0x95   : > { %1016 = vsyncadd (%p729_p0), %s523_s14, 4294967264  ;;  %s541_s6 = scalar_lea.sflag [#allocation12], %s512_s25 }
  0x96   : > { %1018 = dma.done.wait (%p729_p0), %s541_s6, 16  }
  0x97   : > { %1020 = vsyncadd (%p729_p0), %s541_s6, 4294967280  ;;  %s31_s23 = sadd.s32 1, %s1043_s23   ;;  %s1362_s8 = sld [smem:[#allocation19_spill]] }
  0x98   : > { %p28_p9 = scmp.ge.s32.totalorder %s31_s23, 4   ;;  %s1363_s15 = sld [smem:[#allocation18_spill]] }
  0x99   : > { %s1364_s18 = smov %s1027_s19  ;;  %s1365_s19 = smov %s1031_s20 }
  0x9a   : > { %s1367_s21 = smov %s1039_s22  ;;  %30 = sbr.rel (!%p28_p9) target bundleno = 14 (0xe), region = 135 }
  0x9d   : > { %s1366_s20 = smov %s1362_s8 }
  0x9e   : > { %s1368_s22 = smov %s1363_s15 }
  0x9f   :  { %546 = vsyncpa [#allocation3], 1 }
  0xa0   :  { %548 = vsyncpa [#allocation3 + $0x1], 1 }
  0xa1   :  { %549 = vsyncpa [#allocation6], 1 }
  0xa2   :  { %551 = vsyncpa [#allocation6 + $0x1], 1 }
  0xa3   :  { %552 = vsyncpa [#allocation4], 1 }
  0xa4   :  { %554 = vsyncpa [#allocation4 + $0x1], 1 }
  0xa5   :  { %555 = vsyncpa [#allocation9], 1 }
  0xa6   :  { %557 = vsyncpa [#allocation9 + $0x1], 1 }
  0xa7   :  { %558 = vsyncpa [#allocation12], 1 }
  0xa8   :  { %560 = vsyncpa [#allocation12 + $0x1], 1 }

</bundles_post_ra>
